<compile_context>
chip_gen: v7x
topology: tpu7x:2x2x1
jax: 0.10.0
libtpu: 0.0.40
codegen_flags: <defaults>
</compile_context>

<pallas_src>
import functools

import jax
import jax.numpy as jnp
from jax.experimental import pallas as pl
from jax.experimental.pallas import tpu as pltpu


def _ohkm_mse_kernel(*refs, topk, use_target_weight, hw):
    if use_target_weight:
        pred_ref, gt_ref, tw_ref, out_ref = refs
    else:
        pred_ref, gt_ref, out_ref = refs

    p = pred_ref[...]                      # (B, J, HW)
    g = gt_ref[...]                        # (B, J, HW)
    d = p - g
    if use_target_weight:
        d = d * tw_ref[...]                # (B, J, 1) lane-broadcast

    # 0.5 * MSE over heatmap pixels per (batch, joint); fold 0.5/HW into one
    # constant scale applied after the lane-sum (XLU reduce over dense tiles).
    l = jnp.sum(d * d, axis=-1) * (0.5 / hw)          # (B, J) f32

    b, j = l.shape
    iota = jax.lax.broadcasted_iota(jnp.int32, (b, j), 1)
    mask = jnp.ones((b, j), dtype=jnp.bool_)
    acc = jnp.zeros((b, 1), dtype=jnp.float32)
    # torch.topk(k, dim=1) + gather + sum == sum of the k largest per row.
    # Repeated first-index masked-max extraction is tie-faithful to torch.topk.
    for _ in range(topk):
        masked = jnp.where(mask, l, -jnp.inf)
        m = jnp.max(masked, axis=-1, keepdims=True)                 # (B, 1)
        cand = masked == m
        first = jnp.min(jnp.where(cand, iota, j), axis=-1,
                        keepdims=True)                              # (B, 1)
        mask = jnp.logical_and(mask, iota != first)
        acc = acc + m
    # mean over batch of (topk-sum / topk)
    out_ref[...] = jnp.sum(acc, axis=0, keepdims=True) / (topk * b)


def joints_ohkm_mse_loss(output, target, target_weight, *,
                         use_target_weight=True, topk=8):
    """output/target: (B, J, H, W) f32, target_weight: (B, J, 1) f32 -> scalar."""
    B, J, H, W = output.shape
    hw = H * W
    assert topk <= J, f"topk={topk} must be <= num_joints={J}"

    # Free reshapes only -- no transposes, no extra HBM traffic.
    pred = output.reshape(B, J, hw)
    gt = target.reshape(B, J, hw)

    args = [pred, gt]
    if use_target_weight:
        args.append(target_weight.reshape(B, J, 1).astype(output.dtype))

    kernel = functools.partial(_ohkm_mse_kernel, topk=topk,
                               use_target_weight=use_target_weight, hw=hw)

    in_specs = [pl.BlockSpec(memory_space=pltpu.MemorySpace.VMEM)
                for _ in args]
    cost = pl.CostEstimate(
        flops=4 * B * J * hw,
        transcendentals=0,
        bytes_accessed=(2 * B * J * hw + B * J + 1) * 4,
    )
    # TODO(synk): at production pose sizes (e.g. B=64, J=17, HW=3072) tile the
    # MSE stage over a 'parallel' batch/joint grid and keep only the tiny
    # (B, J) top-k in a finalize step; at the sizes here one block is optimal.
    out = pl.pallas_call(
        kernel,
        out_shape=jax.ShapeDtypeStruct((1, 1), jnp.float32),
        in_specs=in_specs,
        out_specs=pl.BlockSpec(memory_space=pltpu.MemorySpace.VMEM),
        cost_estimate=cost,
    )(*args)
    return out[0, 0]


def _reference(output, target, target_weight, *, use_target_weight, topk):
    """Pure-JAX mirror of the PyTorch forward (p*w - g*w formulation)."""
    B, J = output.shape[:2]
    pred_r = output.reshape(B, J, -1)
    gt_r = target.reshape(B, J, -1)
    if use_target_weight:
        pred_r = pred_r * target_weight
        gt_r = gt_r * target_weight
    per_joint = 0.5 * jnp.mean((pred_r - gt_r) ** 2, axis=-1)   # (B, J)
    topv, _ = jax.lax.top_k(per_joint, topk)
    return jnp.mean(jnp.sum(topv, axis=1) / topk)


if __name__ == "__main__":
    key = jax.random.PRNGKey(0)
    k1, k2, k3 = jax.random.split(key, 3)
    B, J, H, W = 2, 16, 16, 16
    topk = 8

    output = jax.random.normal(k1, (B, J, H, W), dtype=jnp.float32)
    target = jax.random.normal(k2, (B, J, H, W), dtype=jnp.float32)
    target_weight = jax.random.uniform(k3, (B, J, 1), dtype=jnp.float32)

    # weighted path
    res_w = joints_ohkm_mse_loss(output, target, target_weight,
                                 use_target_weight=True, topk=topk)
    res_w = jax.block_until_ready(res_w)
    ref_w = _reference(output, target, target_weight,
                       use_target_weight=True, topk=topk)
    assert jnp.allclose(res_w, ref_w, rtol=1e-5, atol=1e-5), (res_w, ref_w)

    # unweighted path
    res_u = joints_ohkm_mse_loss(output, target, target_weight,
                                 use_target_weight=False, topk=topk)
    res_u = jax.block_until_ready(res_u)
    ref_u = _reference(output, target, target_weight,
                       use_target_weight=False, topk=topk)
    assert jnp.allclose(res_u, ref_u, rtol=1e-5, atol=1e-5), (res_u, ref_u)

    print("KERNEL_OK")
</pallas_src>

<mosaic_0001>
module attributes {stable_mosaic.version = 11 : i64} {
  func.func @_ohkm_mse_kernel(%arg0: memref<2x16x256xf32, #tpu.memory_space<vmem>>, %arg1: memref<2x16x256xf32, #tpu.memory_space<vmem>>, %arg2: memref<2x16x1xf32, #tpu.memory_space<vmem>>, %arg3: memref<1x1xf32, #tpu.memory_space<vmem>>) attributes {dimension_semantics = [], scalar_prefetch = 0 : i64, scratch_operands = 0 : i64, tpu.core_type = #tpu.core_type<tc>} {
    %c0 = arith.constant 0 : index
    %c0_0 = arith.constant 0 : index
    %c0_1 = arith.constant 0 : index
    %0 = vector.load %arg0[%c0, %c0_0, %c0_1] : memref<2x16x256xf32, #tpu.memory_space<vmem>>, vector<2x16x256xf32>
    %c0_2 = arith.constant 0 : index
    %c0_3 = arith.constant 0 : index
    %c0_4 = arith.constant 0 : index
    %1 = vector.load %arg1[%c0_2, %c0_3, %c0_4] : memref<2x16x256xf32, #tpu.memory_space<vmem>>, vector<2x16x256xf32>
    %2 = arith.subf %0, %1 : vector<2x16x256xf32>
    %c0_5 = arith.constant 0 : index
    %c0_6 = arith.constant 0 : index
    %c0_7 = arith.constant 0 : index
    %3 = vector.load %arg2[%c0_5, %c0_6, %c0_7] : memref<2x16x1xf32, #tpu.memory_space<vmem>>, vector<2x16x1xf32>
    %4 = vector.broadcast %3 : vector<2x16x1xf32> to vector<2x16x256xf32>
    %5 = arith.mulf %2, %4 : vector<2x16x256xf32>
    %6 = arith.mulf %5, %5 : vector<2x16x256xf32>
    %cst = arith.constant dense<0.000000e+00> : vector<2x16xf32>
    %7 = vector.multi_reduction <add>, %6, %cst [2] : vector<2x16x256xf32> to vector<2x16xf32>
    %cst_8 = arith.constant 0.001953125 : f32
    %8 = vector.broadcast %cst_8 : f32 to vector<2x16xf32>
    %9 = arith.mulf %7, %8 : vector<2x16xf32>
    %10 = tpu.iota {dimensions = array<i32: 1>} : vector<2x16xi32>
    %true = arith.constant true
    %11 = vector.broadcast %true : i1 to vector<2x16xi1>
    %cst_9 = arith.constant 0.000000e+00 : f32
    %12 = vector.broadcast %cst_9 : f32 to vector<2x1xf32>
    %cst_10 = arith.constant 0xFF800000 : f32
    %13 = vector.broadcast %cst_10 : f32 to vector<2x16xf32>
    %14 = arith.select %11, %9, %13 : vector<2x16xi1>, vector<2x16xf32>
    %cst_11 = arith.constant dense<0xFF800000> : vector<2xf32>
    %15 = vector.multi_reduction <maximumf>, %14, %cst_11 [1] : vector<2x16xf32> to vector<2xf32>
    %16 = vector.shape_cast %15 : vector<2xf32> to vector<2x1xf32>
    %17 = vector.broadcast %16 : vector<2x1xf32> to vector<2x16xf32>
    %18 = arith.cmpf oeq, %14, %17 : vector<2x16xf32>
    %c16_i32 = arith.constant 16 : i32
    %19 = vector.broadcast %c16_i32 : i32 to vector<2x16xi32>
    %20 = arith.select %18, %10, %19 : vector<2x16xi1>, vector<2x16xi32>
    %cst_12 = arith.constant dense<2147483647> : vector<2xi32>
    %21 = vector.multi_reduction <minsi>, %20, %cst_12 [1] : vector<2x16xi32> to vector<2xi32>
    %22 = vector.shape_cast %21 : vector<2xi32> to vector<2x1xi32>
    %23 = vector.broadcast %22 : vector<2x1xi32> to vector<2x16xi32>
    %24 = arith.cmpi ne, %10, %23 : vector<2x16xi32>
    %25 = arith.andi %11, %24 : vector<2x16xi1>
    %26 = arith.addf %12, %16 : vector<2x1xf32>
    %cst_13 = arith.constant 0xFF800000 : f32
    %27 = vector.broadcast %cst_13 : f32 to vector<2x16xf32>
    %28 = arith.select %25, %9, %27 : vector<2x16xi1>, vector<2x16xf32>
    %cst_14 = arith.constant dense<0xFF800000> : vector<2xf32>
    %29 = vector.multi_reduction <maximumf>, %28, %cst_14 [1] : vector<2x16xf32> to vector<2xf32>
    %30 = vector.shape_cast %29 : vector<2xf32> to vector<2x1xf32>
    %31 = vector.broadcast %30 : vector<2x1xf32> to vector<2x16xf32>
    %32 = arith.cmpf oeq, %28, %31 : vector<2x16xf32>
    %c16_i32_15 = arith.constant 16 : i32
    %33 = vector.broadcast %c16_i32_15 : i32 to vector<2x16xi32>
    %34 = arith.select %32, %10, %33 : vector<2x16xi1>, vector<2x16xi32>
    %cst_16 = arith.constant dense<2147483647> : vector<2xi32>
    %35 = vector.multi_reduction <minsi>, %34, %cst_16 [1] : vector<2x16xi32> to vector<2xi32>
    %36 = vector.shape_cast %35 : vector<2xi32> to vector<2x1xi32>
    %37 = vector.broadcast %36 : vector<2x1xi32> to vector<2x16xi32>
    %38 = arith.cmpi ne, %10, %37 : vector<2x16xi32>
    %39 = arith.andi %25, %38 : vector<2x16xi1>
    %40 = arith.addf %26, %30 : vector<2x1xf32>
    %cst_17 = arith.constant 0xFF800000 : f32
    %41 = vector.broadcast %cst_17 : f32 to vector<2x16xf32>
    %42 = arith.select %39, %9, %41 : vector<2x16xi1>, vector<2x16xf32>
    %cst_18 = arith.constant dense<0xFF800000> : vector<2xf32>
    %43 = vector.multi_reduction <maximumf>, %42, %cst_18 [1] : vector<2x16xf32> to vector<2xf32>
    %44 = vector.shape_cast %43 : vector<2xf32> to vector<2x1xf32>
    %45 = vector.broadcast %44 : vector<2x1xf32> to vector<2x16xf32>
    %46 = arith.cmpf oeq, %42, %45 : vector<2x16xf32>
    %c16_i32_19 = arith.constant 16 : i32
    %47 = vector.broadcast %c16_i32_19 : i32 to vector<2x16xi32>
    %48 = arith.select %46, %10, %47 : vector<2x16xi1>, vector<2x16xi32>
    %cst_20 = arith.constant dense<2147483647> : vector<2xi32>
    %49 = vector.multi_reduction <minsi>, %48, %cst_20 [1] : vector<2x16xi32> to vector<2xi32>
    %50 = vector.shape_cast %49 : vector<2xi32> to vector<2x1xi32>
    %51 = vector.broadcast %50 : vector<2x1xi32> to vector<2x16xi32>
    %52 = arith.cmpi ne, %10, %51 : vector<2x16xi32>
    %53 = arith.andi %39, %52 : vector<2x16xi1>
    %54 = arith.addf %40, %44 : vector<2x1xf32>
    %cst_21 = arith.constant 0xFF800000 : f32
    %55 = vector.broadcast %cst_21 : f32 to vector<2x16xf32>
    %56 = arith.select %53, %9, %55 : vector<2x16xi1>, vector<2x16xf32>
    %cst_22 = arith.constant dense<0xFF800000> : vector<2xf32>
    %57 = vector.multi_reduction <maximumf>, %56, %cst_22 [1] : vector<2x16xf32> to vector<2xf32>
    %58 = vector.shape_cast %57 : vector<2xf32> to vector<2x1xf32>
    %59 = vector.broadcast %58 : vector<2x1xf32> to vector<2x16xf32>
    %60 = arith.cmpf oeq, %56, %59 : vector<2x16xf32>
    %c16_i32_23 = arith.constant 16 : i32
    %61 = vector.broadcast %c16_i32_23 : i32 to vector<2x16xi32>
    %62 = arith.select %60, %10, %61 : vector<2x16xi1>, vector<2x16xi32>
    %cst_24 = arith.constant dense<2147483647> : vector<2xi32>
    %63 = vector.multi_reduction <minsi>, %62, %cst_24 [1] : vector<2x16xi32> to vector<2xi32>
    %64 = vector.shape_cast %63 : vector<2xi32> to vector<2x1xi32>
    %65 = vector.broadcast %64 : vector<2x1xi32> to vector<2x16xi32>
    %66 = arith.cmpi ne, %10, %65 : vector<2x16xi32>
    %67 = arith.andi %53, %66 : vector<2x16xi1>
    %68 = arith.addf %54, %58 : vector<2x1xf32>
    %cst_25 = arith.constant 0xFF800000 : f32
    %69 = vector.broadcast %cst_25 : f32 to vector<2x16xf32>
    %70 = arith.select %67, %9, %69 : vector<2x16xi1>, vector<2x16xf32>
    %cst_26 = arith.constant dense<0xFF800000> : vector<2xf32>
    %71 = vector.multi_reduction <maximumf>, %70, %cst_26 [1] : vector<2x16xf32> to vector<2xf32>
    %72 = vector.shape_cast %71 : vector<2xf32> to vector<2x1xf32>
    %73 = vector.broadcast %72 : vector<2x1xf32> to vector<2x16xf32>
    %74 = arith.cmpf oeq, %70, %73 : vector<2x16xf32>
    %c16_i32_27 = arith.constant 16 : i32
    %75 = vector.broadcast %c16_i32_27 : i32 to vector<2x16xi32>
    %76 = arith.select %74, %10, %75 : vector<2x16xi1>, vector<2x16xi32>
    %cst_28 = arith.constant dense<2147483647> : vector<2xi32>
    %77 = vector.multi_reduction <minsi>, %76, %cst_28 [1] : vector<2x16xi32> to vector<2xi32>
    %78 = vector.shape_cast %77 : vector<2xi32> to vector<2x1xi32>
    %79 = vector.broadcast %78 : vector<2x1xi32> to vector<2x16xi32>
    %80 = arith.cmpi ne, %10, %79 : vector<2x16xi32>
    %81 = arith.andi %67, %80 : vector<2x16xi1>
    %82 = arith.addf %68, %72 : vector<2x1xf32>
    %cst_29 = arith.constant 0xFF800000 : f32
    %83 = vector.broadcast %cst_29 : f32 to vector<2x16xf32>
    %84 = arith.select %81, %9, %83 : vector<2x16xi1>, vector<2x16xf32>
    %cst_30 = arith.constant dense<0xFF800000> : vector<2xf32>
    %85 = vector.multi_reduction <maximumf>, %84, %cst_30 [1] : vector<2x16xf32> to vector<2xf32>
    %86 = vector.shape_cast %85 : vector<2xf32> to vector<2x1xf32>
    %87 = vector.broadcast %86 : vector<2x1xf32> to vector<2x16xf32>
    %88 = arith.cmpf oeq, %84, %87 : vector<2x16xf32>
    %c16_i32_31 = arith.constant 16 : i32
    %89 = vector.broadcast %c16_i32_31 : i32 to vector<2x16xi32>
    %90 = arith.select %88, %10, %89 : vector<2x16xi1>, vector<2x16xi32>
    %cst_32 = arith.constant dense<2147483647> : vector<2xi32>
    %91 = vector.multi_reduction <minsi>, %90, %cst_32 [1] : vector<2x16xi32> to vector<2xi32>
    %92 = vector.shape_cast %91 : vector<2xi32> to vector<2x1xi32>
    %93 = vector.broadcast %92 : vector<2x1xi32> to vector<2x16xi32>
    %94 = arith.cmpi ne, %10, %93 : vector<2x16xi32>
    %95 = arith.andi %81, %94 : vector<2x16xi1>
    %96 = arith.addf %82, %86 : vector<2x1xf32>
    %cst_33 = arith.constant 0xFF800000 : f32
    %97 = vector.broadcast %cst_33 : f32 to vector<2x16xf32>
    %98 = arith.select %95, %9, %97 : vector<2x16xi1>, vector<2x16xf32>
    %cst_34 = arith.constant dense<0xFF800000> : vector<2xf32>
    %99 = vector.multi_reduction <maximumf>, %98, %cst_34 [1] : vector<2x16xf32> to vector<2xf32>
    %100 = vector.shape_cast %99 : vector<2xf32> to vector<2x1xf32>
    %101 = vector.broadcast %100 : vector<2x1xf32> to vector<2x16xf32>
    %102 = arith.cmpf oeq, %98, %101 : vector<2x16xf32>
    %c16_i32_35 = arith.constant 16 : i32
    %103 = vector.broadcast %c16_i32_35 : i32 to vector<2x16xi32>
    %104 = arith.select %102, %10, %103 : vector<2x16xi1>, vector<2x16xi32>
    %cst_36 = arith.constant dense<2147483647> : vector<2xi32>
    %105 = vector.multi_reduction <minsi>, %104, %cst_36 [1] : vector<2x16xi32> to vector<2xi32>
    %106 = vector.shape_cast %105 : vector<2xi32> to vector<2x1xi32>
    %107 = vector.broadcast %106 : vector<2x1xi32> to vector<2x16xi32>
    %108 = arith.cmpi ne, %10, %107 : vector<2x16xi32>
    %109 = arith.andi %95, %108 : vector<2x16xi1>
    %110 = arith.addf %96, %100 : vector<2x1xf32>
    %cst_37 = arith.constant 0xFF800000 : f32
    %111 = vector.broadcast %cst_37 : f32 to vector<2x16xf32>
    %112 = arith.select %109, %9, %111 : vector<2x16xi1>, vector<2x16xf32>
    %cst_38 = arith.constant dense<0xFF800000> : vector<2xf32>
    %113 = vector.multi_reduction <maximumf>, %112, %cst_38 [1] : vector<2x16xf32> to vector<2xf32>
    %114 = vector.shape_cast %113 : vector<2xf32> to vector<2x1xf32>
    %115 = arith.addf %110, %114 : vector<2x1xf32>
    %cst_39 = arith.constant dense<0.000000e+00> : vector<1xf32>
    %116 = vector.multi_reduction <add>, %115, %cst_39 [0] : vector<2x1xf32> to vector<1xf32>
    %117 = vector.shape_cast %116 : vector<1xf32> to vector<1x1xf32>
    %cst_40 = arith.constant 1.600000e+01 : f32
    %118 = vector.broadcast %cst_40 : f32 to vector<1x1xf32>
    %119 = arith.divf %117, %118 : vector<1x1xf32>
    %c0_41 = arith.constant 0 : index
    %c0_42 = arith.constant 0 : index
    %120 = vector.load %arg3[%c0_41, %c0_42] : memref<1x1xf32, #tpu.memory_space<vmem>>, vector<1x1xf32>
    tpu.vector_store %arg3[%c0_41, %c0_42], %119 {strides = array<i32>} : memref<1x1xf32, #tpu.memory_space<vmem>>, vector<1x1xf32>,
    return
  }
}

</mosaic_0001>

<bundles_post_ra>
// kernel: tpu_custom_call.1
= control target key start
LH: loop header
LB: loop body
LE: loop exit
PB: predicated region body
PF: predicated region fallthrough
CT: control target
= control target key end

     0   :  { %8 = vsyncpa [#allocation3], 0  ;;  %s676_s0 = inlined_call_operand.hbm [shape: f32[2,16,256], index: 0, kind: input, shape index: {}]   ;;  %s677_s1 = inlined_call_operand.hbm [shape: f32[2,16,256], index: 1, kind: input, shape index: {}]   ;;  %s678_s2 = inlined_call_operand.vmem [shape: f32[2,16,1], index: 2, kind: input, shape index: {}]   ;;  %s679_s3 = inlined_call_operand.hbm [shape: f32[1,1], index: 3, kind: output, shape index: {}]  }
   0x1   :  { %9 = vsyncpa [#allocation6], 0 }
   0x2   :  { %10 = vsyncpa [#allocation4], 0  ;;  %s487_s12 = smov [#allocation2]   ;;  %s415_s16 = scalar_lea.hbm %s676_s0, 1024 }
   0x3   :  { %s16_s13 = sshll.u32 %s487_s12, 4  ;;  %p416_p0 = scmp.ne.s32.totalorder %s676_s0, %s415_s16  ;;  %s17_s13 = int_to_ptr.vmem [resolvable:$true] %s16_s13 }
   0x4   :  { %p419_p1 = scmp.lt.u32.totalorder %s415_s16, %s676_s0 }
   0x6   :  { %p421_p2 = pnand %p419_p1, %p416_p0 }
   0x8   :  { %424 = shalt.err (!%p421_p2)
}
   0x9   :  { %s425_s21 = scalar_lea.vmem %s17_s13, 1024  ;;  %p430_p4 = scmp.lt.s32.totalorder %s17_s13, %s17_s13 }
   0xa   :  { %p426_p3 = scmp.ne.s32.totalorder %s17_s13, %s425_s21  ;;  %p431_p5 = scmp.lt.s32.totalorder %s425_s21, %s425_s21 }
   0xc   :  { %p432_p6 = por %p431_p5, %p430_p4 }
   0xe   :  { %p433_p7 = pnand %p432_p6, %p426_p3 }
  0x10   :  { %436 = shalt.err (!%p433_p7)
}
  0x11   :  { %s488_s22 = smov 256   ;;  %s489_s23 = smov 16  }
  0x12   :  { %22 = dma.hbm_to_vmem [thread:$0]  %s676_s0, 1024, %s17_s13, [#allocation3], %s488_s22, %s488_s22, %s489_s23  }
  0x13   :  { %s490_s26 = smov [#allocation5]   ;;  %s437_s30 = scalar_lea.hbm %s677_s1, 1024 }
  0x14   :  { %s28_s27 = sshll.u32 %s490_s26, 4  ;;  %p438_p8 = scmp.ne.s32.totalorder %s677_s1, %s437_s30  ;;  %s29_s27 = int_to_ptr.vmem [resolvable:$true] %s28_s27 }
  0x15   :  { %p441_p9 = scmp.lt.u32.totalorder %s437_s30, %s677_s1 }
  0x17   :  { %p443_p10 = pnand %p441_p9, %p438_p8 }
  0x19   :  { %446 = shalt.err (!%p443_p10)
}
  0x1a   :  { %s447_s8 = scalar_lea.vmem %s29_s27, 1024  ;;  %p452_p12 = scmp.lt.s32.totalorder %s29_s27, %s29_s27 }
  0x1b   :  { %p448_p11 = scmp.ne.s32.totalorder %s29_s27, %s447_s8  ;;  %p453_p13 = scmp.lt.s32.totalorder %s447_s8, %s447_s8 }
  0x1d   :  { %p454_p0 = por %p453_p13, %p452_p12 }
  0x1f   :  { %p455_p1 = pnand %p454_p0, %p448_p11 }
  0x21   :  { %458 = shalt.err (!%p455_p1)
}
  0x22   :  { %34 = dma.hbm_to_vmem [thread:$0]  %s677_s1, 1024, %s29_s27, [#allocation6], %s488_s22, %s488_s22, %s489_s23  }
  0x23   :  { %481 = dma.done.wait [#allocation3], 1024  }
  0x24   :  { %482 = vsyncadd [#allocation3], 4294966272 }
  0x25   :  { %483 = dma.done.wait [#allocation6], 1024  }
  0x26   :  { %484 = vsyncadd [#allocation6], 4294966272  ;;  %v491_v0 = vmov 0   ;;  %v69_v1 = vld [vmem:[%s678_s2 + $0x10] sm:$0xff]  ;;  %v67_v2 = vld [vmem:[%s678_s2] sm:$0xff]  ;;  %v123_v53 = vlaneseq  ;;  %vm138_vm0 = vcmask 130112  }
  0x27   :  { %414 = vset.pattern.permute.xlu1 %v491_v0  ;;  %413 = vset.pattern.permute.xlu0 %v491_v0  ;;  %v70_v3 = vld [vmem:[%s678_s2 + $0x18] sm:$0xff]  ;;  %v68_v4 = vld [vmem:[%s678_s2 + $0x8] sm:$0xff]  ;;  %v47_v5 = vld [vmem:[#allocation2 + $0x20] sm:$0xff]  ;;  %vm149_vm1 = vcmask 1041409   ;;  %vm152_vm2 = vcmask 123904   ;;  %s492_s2 = smov [#allocation7]  }
  0x28   :  { %83 = vperm.xlu1 %414, %v69_v1   ;;  %73 = vperm.xlu0 %413, %v67_v2   ;;  %v48_v6 = vld [vmem:[#allocation2 + $0x28] sm:$0xff]  ;;  %v55_v7 = vld [vmem:[#allocation5 + $0x20] sm:$0xff]  ;;  %v45_v13 = vld [vmem:[#allocation2 + $0x10] sm:$0xff]  ;;  %v549_v54 = vand.u32 127, %v123_v53  ;;  %v130_v57 = vshrl.u32 %v123_v53, 7  ;;  %s397_s17 = sshll.u32 %s492_s2, 4  ;;  %s398_s17 = int_to_ptr.vmem [resolvable:$true] %s397_s17 }
  0x29   :  { %v56_v8 = vld [vmem:[#allocation5 + $0x28] sm:$0xff]  ;;  %v43_v9 = vld [vmem:[#allocation2] sm:$0xff]  ;;  %v63_v14 = vsub.f32 %v47_v5, %v55_v7  ;;  %v46_v18 = vld [vmem:[#allocation2 + $0x18] sm:$0xff]  ;;  %s459_s18 = scalar_lea.vmem %s398_s17, 16  ;;  %s463_s19 = scalar_lea.vmem %s398_s17, 32 }
  0x2a   :  { %v44_v10 = vld [vmem:[#allocation2 + $0x8] sm:$0xff]  ;;  %v51_v11 = vld [vmem:[#allocation5] sm:$0xff]  ;;  %v64_v15 = vsub.f32 %v48_v6, %v56_v8  ;;  %v53_v19 = vld [vmem:[#allocation5 + $0x10] sm:$0xff]  ;;  %v133_v56 = vadd.s32 4294967288, %v549_v54  ;;  %v131_v62 = vsub.s32 %v549_v54, %v130_v57  ;;  %p460_p2 = scmp.ne.s32.totalorder %s398_s17, %s459_s18  ;;  %p464_p3 = scmp.lt.s32.totalorder %s398_s17, %s398_s17 }
  0x2b   :  { %v52_v12 = vld [vmem:[#allocation5 + $0x8] sm:$0xff]  ;;  %v59_v16 = vsub.f32 %v43_v9, %v51_v11  ;;  %v54_v20 = vld [vmem:[#allocation5 + $0x18] sm:$0xff]  ;;  %v49_v21 = vld [vmem:[#allocation2 + $0x30] sm:$0xff]  ;;  %v61_v27 = vsub.f32 %v45_v13, %v53_v19  ;;  %v159_v11 = vsub.s32 0, %v130_v57  ;;  %p465_p4 = scmp.lt.s32.totalorder %s463_s19, %s459_s18 }
  0x2c   :  { %88 = vperm.xlu1 %414, %v70_v3   ;;  %78 = vperm.xlu0 %413, %v68_v4   ;;  %v60_v17 = vsub.f32 %v44_v10, %v52_v12  ;;  %v50_v22 = vld [vmem:[#allocation2 + $0x38] sm:$0xff]  ;;  %v57_v23 = vld [vmem:[#allocation5 + $0x30] sm:$0xff]  ;;  %v62_v28 = vsub.f32 %v46_v18, %v54_v20  ;;  %v136_v60 = vsub.s32 %v133_v56, %v130_v57  ;;  %v163_v12 = vsub.s32 1, %v130_v57 }
  0x2d   :  { %v58_v24 = vld [vmem:[#allocation5 + $0x38] sm:$0xff]  ;;  %v65_v33 = vsub.f32 %v49_v21, %v57_v23  ;;  %p466_p5 = por %p465_p4, %p464_p3 }
  0x2e   :  { %v66_v34 = vsub.f32 %v50_v22, %v58_v24 }
  0x2f   :  { %p467_p6 = pnand %p466_p5, %p460_p2 }
  0xa7   :  { %v84_v25 = vpop.permute.xlu1 %83  ;;  %v74_v26 = vpop.permute.xlu0 %73 }
  0xa8   :  { %v95_v29 = vmul.f32 %v84_v25, %v63_v14  ;;  %v96_v30 = vmul.f32 %v84_v25, %v64_v15  ;;  %v91_v31 = vmul.f32 %v74_v26, %v59_v16  ;;  %v92_v32 = vmul.f32 %v74_v26, %v60_v17 }
  0xaa   :  { %v99_v35 = vmul.f32 %v91_v31, %v91_v31  ;;  %v100_v36 = vmul.f32 %v92_v32, %v92_v32  ;;  %v103_v37 = vmul.f32 %v95_v29, %v95_v29  ;;  %v104_v38 = vmul.f32 %v96_v30, %v96_v30 }
  0xab   :  { %v89_v39 = vpop.permute.xlu1 %88  ;;  %v79_v40 = vpop.permute.xlu0 %78 }
  0xac   :  { %v93_v41 = vmul.f32 %v79_v40, %v61_v27  ;;  %v94_v42 = vmul.f32 %v79_v40, %v62_v28  ;;  %v97_v43 = vmul.f32 %v89_v39, %v65_v33  ;;  %v98_v44 = vmul.f32 %v89_v39, %v66_v34 }
  0xad   :  { %v107_v45 = vadd.f32 %v100_v36, %v99_v35  ;;  %v113_v48 = vadd.f32 %v104_v38, %v103_v37 }
  0xae   :  { %v101_v46 = vmul.f32 %v93_v41, %v93_v41  ;;  %v102_v47 = vmul.f32 %v94_v42, %v94_v42  ;;  %v105_v50 = vmul.f32 %v97_v43, %v97_v43  ;;  %v106_v51 = vmul.f32 %v98_v44, %v98_v44 }
  0xaf   :  { %108 = vadd.xlane.f32.xlu0 %v107_v45 }
  0xb0   :  { %v110_v49 = vadd.f32 %v102_v47, %v101_v46  ;;  %v116_v52 = vadd.f32 %v106_v51, %v105_v50 }
  0xb2   :  { %111 = vadd.xlane.f32.xlu1 %v110_v49 }
  0xb3   :  { %114 = vadd.xlane.f32.xlu0 %v113_v48 }
  0xb7   :  { %117 = vadd.xlane.f32.xlu0 %v116_v52 }
  0xcd   :  { %172 = vbcast.lane.b32.xlu0 %v549_v54, 256 }
 0x13c   :  { %v109_v55 = vpop.xlane.xlu0 %108 }
 0x13d   :  { %v119_v63 = vmul.f32 0.001953125, %v109_v55 }
 0x13f   :  { %v112_v58 = vpop.xlane.xlu1 %111  ;;  %v132_v4 = vrot.slane %v119_v63, %v131_v62 }
 0x140   :  { %v115_v59 = vpop.xlane.xlu0 %114  ;;  %v120_v61 = vmul.f32 0.001953125, %v112_v58 }
 0x141   :  { %v121_v0 = vmul.f32 0.001953125, %v115_v59 }
 0x142   :  { %v137_v2 = vrot.slane %v120_v61, %v136_v60 }
 0x143   :  { %v143_v5 = vrot.slane %v121_v0, %v131_v62 }
 0x144   :  { %v118_v1 = vpop.xlane.xlu0 %117  ;;  %v139_v7 = vsel %vm138_vm0, %v137_v2, %v132_v4 }
 0x145   :  { %v122_v3 = vmul.f32 0.001953125, %v118_v1 }
 0x147   :  { %v147_v6 = vrot.slane %v122_v3, %v136_v60 }
 0x148   :  { %v173_v16 = vpop.permute.xlu0 %172 }
 0x149   :  { %v148_v8 = vsel %vm138_vm0, %v147_v6, %v143_v5 }
 0x14a   :  { %v557_v9 = vsel %vm149_vm1, %v148_v8, %v139_v7 }
 0x14b   :  { %v153_v10 = vsel %vm152_vm2, %v557_v9, -inf }
 0x14c   :  { %154 = vmax.xlane.f32.xlu1 %v153_v10 }
 0x15d   :  { %176 = vbcast.lane.b32.xlu1 %v549_v54, 264 }
 0x1d9   :  { %v562_v13 = vpop.xlane.xlu1 %154 }
 0x1da   :  { %v160_v14 = vrot.slane %v562_v13, %v159_v11  ;;  %v164_v15 = vrot.slane %v562_v13, %v163_v12 }
 0x1dc   :  { %vm167_vm3 = vcmp.eq.f32.partialorder %v119_v63, %v160_v14  ;;  %vm168_vm4 = vcmp.eq.f32.partialorder %v120_v61, %v160_v14  ;;  %vm169_vm5 = vcmp.eq.f32.partialorder %v121_v0, %v164_v15  ;;  %vm170_vm6 = vcmp.eq.f32.partialorder %v122_v3, %v164_v15 }
 0x1dd   :  { %v177_v17 = vpop.permute.xlu1 %176  ;;  %v178_v18 = vsel %vm167_vm3, %v173_v16, 16  ;;  %v180_v20 = vsel %vm169_vm5, %v173_v16, 16 }
 0x1de   :  { %183 = vperm.xlu1 %414, %v178_v18   ;;  %v179_v19 = vsel %vm168_vm4, %v177_v17, 16  ;;  %v181_v21 = vsel %vm170_vm6, %v177_v17, 16 }
 0x1df   :  { %186 = vperm.xlu0 %413, %v179_v19  }
 0x1e2   :  { %189 = vperm.xlu1 %414, %v180_v20  }
 0x1e3   :  { %192 = vperm.xlu0 %413, %v181_v21  }
 0x25d   :  { %v184_v22 = vpop.permute.xlu1 %183 }
 0x25e   :  { %v187_v23 = vpop.permute.xlu0 %186  ;;  %v197_v24 = vrot.slane %v184_v22, %v131_v62 }
 0x25f   :  { %v201_v25 = vrot.slane %v187_v23, %v136_v60 }
 0x261   :  { %v190_v26 = vpop.permute.xlu1 %189  ;;  %v202_v30 = vsel %vm138_vm0, %v201_v25, %v197_v24 }
 0x262   :  { %v206_v27 = vrot.slane %v190_v26, %v131_v62  ;;  %v193_v28 = vpop.permute.xlu0 %192 }
 0x263   :  { %v210_v29 = vrot.slane %v193_v28, %v136_v60 }
 0x265   :  { %v211_v31 = vsel %vm138_vm0, %v210_v29, %v206_v27 }
 0x266   :  { %v212_v32 = vsel %vm149_vm1, %v211_v31, %v202_v30 }
 0x267   :  { %v213_v33 = vsel %vm152_vm2, %v212_v32, 2147483647 }
 0x268   :  { %v215_v34 = vshra.s32 %v213_v33, 16  ;;  %v214_v36 = vand.u32 65535, %v213_v33 }
 0x26a   :  { %v217_v35 = vcvt.s32.f32 %v215_v34  ;;  %v216_v38 = vcvt.s32.f32 %v214_v36 }
 0x26c   :  { %218 = vmin.xlane.f32.xlu1 %v217_v35 }
 0x2f9   :  { %v219_v37 = vpop.xlane.xlu1 %218 }
 0x2fa   :  { %vm220_vm7 = vcmp.eq.f32.partialorder %v217_v35, %v219_v37  ;;  %v225_v40 = vcvt.f32.s32 %v219_v37 }
 0x2fb   :  { %v221_v39 = vsel %vm220_vm7, %v216_v38, inf }
 0x2fc   :  { %222 = vmin.xlane.f32.xlu0 %v221_v39  ;;  %v226_v42 = vshll.u32 %v225_v40, 16 }
 0x389   :  { %v223_v41 = vpop.xlane.xlu0 %222 }
 0x38a   :  { %v224_v43 = vcvt.f32.s32 %v223_v41 }
 0x38c   :  { %v227_v44 = vadd.s32 %v226_v42, %v224_v43 }
 0x38e   :  { %vm228_vm8 = vcmp.ne.s32.totalorder %v549_v54, %v227_v44 }
 0x38f   :  { %v230_v45 = vsel %vm228_vm8, %v557_v9, -inf }
 0x390   :  { %v231_v46 = vsel %vm152_vm2, %v230_v45, -inf }
 0x391   :  { %232 = vmax.xlane.f32.xlu0 %v231_v46 }
 0x41e   :  { %v575_v47 = vpop.xlane.xlu0 %232 }
 0x41f   :  { %vm234_vm9 = vcmp.eq.f32.partialorder %v230_v45, %v575_v47 }
 0x420   :  { %v235_v48 = vsel %vm234_vm9, %v549_v54, 16 }
 0x421   :  { %v236_v49 = vsel %vm152_vm2, %v235_v48, 2147483647 }
 0x422   :  { %v238_v50 = vshra.s32 %v236_v49, 16  ;;  %v237_v52 = vand.u32 65535, %v236_v49 }
 0x424   :  { %v240_v51 = vcvt.s32.f32 %v238_v50  ;;  %v239_v55 = vcvt.s32.f32 %v237_v52 }
 0x426   :  { %241 = vmin.xlane.f32.xlu1 %v240_v51 }
 0x4b3   :  { %v242_v53 = vpop.xlane.xlu1 %241 }
 0x4b4   :  { %vm243_vm10 = vcmp.eq.f32.partialorder %v240_v51, %v242_v53  ;;  %v248_v57 = vcvt.f32.s32 %v242_v53 }
 0x4b5   :  { %v244_v56 = vsel %vm243_vm10, %v239_v55, inf }
 0x4b6   :  { %245 = vmin.xlane.f32.xlu0 %v244_v56  ;;  %v249_v59 = vshll.u32 %v248_v57, 16 }
 0x543   :  { %v246_v58 = vpop.xlane.xlu0 %245 }
 0x544   :  { %v247_v60 = vcvt.f32.s32 %v246_v58 }
 0x546   :  { %v250_v61 = vadd.s32 %v249_v59, %v247_v60 }
 0x548   :  { %vm251_vm11 = vcmp.ne.s32.totalorder %v549_v54, %v250_v61 }
 0x549   :  { %vm583_vm12 = vmand %vm228_vm8, %vm251_vm11 }
 0x54a   :  { %v254_v63 = vsel %vm583_vm12, %v557_v9, -inf }
 0x54b   :  { %v255_v0 = vsel %vm152_vm2, %v254_v63, -inf }
 0x54c   :  { %256 = vmax.xlane.f32.xlu1 %v255_v0 }
 0x5d9   :  { %v591_v1 = vpop.xlane.xlu1 %256 }
 0x5da   :  { %vm258_vm13 = vcmp.eq.f32.partialorder %v254_v63, %v591_v1 }
 0x5db   :  { %v259_v2 = vsel %vm258_vm13, %v549_v54, 16 }
 0x5dc   :  { %v260_v3 = vsel %vm152_vm2, %v259_v2, 2147483647 }
 0x5dd   :  { %v262_v4 = vshra.s32 %v260_v3, 16  ;;  %v261_v6 = vand.u32 65535, %v260_v3 }
 0x5df   :  { %v264_v5 = vcvt.s32.f32 %v262_v4  ;;  %v263_v8 = vcvt.s32.f32 %v261_v6 }
 0x5e1   :  { %265 = vmin.xlane.f32.xlu0 %v264_v5 }
 0x66e   :  { %v266_v7 = vpop.xlane.xlu0 %265 }
 0x66f   :  { %vm267_vm14 = vcmp.eq.f32.partialorder %v264_v5, %v266_v7  ;;  %v272_v11 = vcvt.f32.s32 %v266_v7 }
 0x670   :  { %v268_v10 = vsel %vm267_vm14, %v263_v8, inf }
 0x671   :  { %269 = vmin.xlane.f32.xlu1 %v268_v10  ;;  %v273_v14 = vshll.u32 %v272_v11, 16 }
 0x6fe   :  { %v270_v12 = vpop.xlane.xlu1 %269 }
 0x6ff   :  { %v271_v15 = vcvt.f32.s32 %v270_v12 }
 0x701   :  { %v274_v16 = vadd.s32 %v273_v14, %v271_v15 }
 0x703   :  { %vm275_vm15 = vcmp.ne.s32.totalorder %v549_v54, %v274_v16 }
 0x704   :  { %vm599_vm0 = vmand %vm583_vm12, %vm275_vm15 }
 0x705   :  { %v278_v18 = vsel %vm599_vm0, %v557_v9, -inf }
 0x706   :  { %v279_v19 = vsel %vm152_vm2, %v278_v18, -inf }
 0x707   :  { %280 = vmax.xlane.f32.xlu0 %v279_v19 }
 0x794   :  { %v607_v20 = vpop.xlane.xlu0 %280 }
 0x795   :  { %vm282_vm1 = vcmp.eq.f32.partialorder %v278_v18, %v607_v20 }
 0x796   :  { %v283_v21 = vsel %vm282_vm1, %v549_v54, 16 }
 0x797   :  { %v284_v22 = vsel %vm152_vm2, %v283_v21, 2147483647 }
 0x798   :  { %v286_v23 = vshra.s32 %v284_v22, 16  ;;  %v285_v25 = vand.u32 65535, %v284_v22 }
 0x79a   :  { %v288_v24 = vcvt.s32.f32 %v286_v23  ;;  %v287_v27 = vcvt.s32.f32 %v285_v25 }
 0x79c   :  { %289 = vmin.xlane.f32.xlu1 %v288_v24 }
 0x829   :  { %v290_v26 = vpop.xlane.xlu1 %289 }
 0x82a   :  { %vm291_vm3 = vcmp.eq.f32.partialorder %v288_v24, %v290_v26  ;;  %v296_v29 = vcvt.f32.s32 %v290_v26 }
 0x82b   :  { %v292_v28 = vsel %vm291_vm3, %v287_v27, inf  ;;  %vm379_vm3 = vcmask 1041408  }
 0x82c   :  { %293 = vmin.xlane.f32.xlu0 %v292_v28  ;;  %v297_v31 = vshll.u32 %v296_v29, 16  ;;  %v253_v29 = vadd.f32 %v575_v47, %v562_v13 }
 0x8b9   :  { %v294_v30 = vpop.xlane.xlu0 %293 }
 0x8ba   :  { %v295_v32 = vcvt.f32.s32 %v294_v30  ;;  %v277_v30 = vadd.f32 %v591_v1, %v253_v29 }
 0x8bc   :  { %v298_v33 = vadd.s32 %v297_v31, %v295_v32  ;;  %v301_v31 = vadd.f32 %v607_v20, %v277_v30 }
 0x8be   :  { %vm299_vm4 = vcmp.ne.s32.totalorder %v549_v54, %v298_v33 }
 0x8bf   :  { %vm615_vm5 = vmand %vm599_vm0, %vm299_vm4 }
 0x8c0   :  { %v302_v35 = vsel %vm615_vm5, %v557_v9, -inf }
 0x8c1   :  { %v303_v36 = vsel %vm152_vm2, %v302_v35, -inf }
 0x8c2   :  { %304 = vmax.xlane.f32.xlu1 %v303_v36 }
 0x94f   :  { %v623_v37 = vpop.xlane.xlu1 %304 }
 0x950   :  { %vm306_vm6 = vcmp.eq.f32.partialorder %v302_v35, %v623_v37  ;;  %v325_v32 = vadd.f32 %v623_v37, %v301_v31 }
 0x951   :  { %v307_v38 = vsel %vm306_vm6, %v549_v54, 16 }
 0x952   :  { %v308_v39 = vsel %vm152_vm2, %v307_v38, 2147483647 }
 0x953   :  { %v310_v40 = vshra.s32 %v308_v39, 16  ;;  %v309_v42 = vand.u32 65535, %v308_v39 }
 0x955   :  { %v312_v41 = vcvt.s32.f32 %v310_v40  ;;  %v311_v44 = vcvt.s32.f32 %v309_v42 }
 0x957   :  { %313 = vmin.xlane.f32.xlu0 %v312_v41 }
 0x9e4   :  { %v314_v43 = vpop.xlane.xlu0 %313 }
 0x9e5   :  { %vm315_vm7 = vcmp.eq.f32.partialorder %v312_v41, %v314_v43  ;;  %v320_v46 = vcvt.f32.s32 %v314_v43 }
 0x9e6   :  { %v316_v45 = vsel %vm315_vm7, %v311_v44, inf }
 0x9e7   :  { %317 = vmin.xlane.f32.xlu1 %v316_v45  ;;  %v321_v49 = vshll.u32 %v320_v46, 16 }
 0xa74   :  { %v318_v48 = vpop.xlane.xlu1 %317 }
 0xa75   :  { %v319_v50 = vcvt.f32.s32 %v318_v48 }
 0xa77   :  { %v322_v51 = vadd.s32 %v321_v49, %v319_v50 }
 0xa79   :  { %vm323_vm8 = vcmp.ne.s32.totalorder %v549_v54, %v322_v51 }
 0xa7a   :  { %vm631_vm9 = vmand %vm615_vm5, %vm323_vm8 }
 0xa7b   :  { %v326_v53 = vsel %vm631_vm9, %v557_v9, -inf }
 0xa7c   :  { %v327_v55 = vsel %vm152_vm2, %v326_v53, -inf }
 0xa7d   :  { %328 = vmax.xlane.f32.xlu0 %v327_v55 }
 0xb0a   :  { %v329_v56 = vpop.xlane.xlu0 %328 }
 0xb0b   :  { %vm330_vm10 = vcmp.eq.f32.partialorder %v326_v53, %v329_v56  ;;  %v349_v33 = vadd.f32 %v329_v56, %v325_v32 }
 0xb0c   :  { %v331_v57 = vsel %vm330_vm10, %v549_v54, 16 }
 0xb0d   :  { %v332_v58 = vsel %vm152_vm2, %v331_v57, 2147483647 }
 0xb0e   :  { %v334_v59 = vshra.s32 %v332_v58, 16  ;;  %v333_v61 = vand.u32 65535, %v332_v58 }
 0xb10   :  { %v336_v60 = vcvt.s32.f32 %v334_v59  ;;  %v335_v63 = vcvt.s32.f32 %v333_v61 }
 0xb12   :  { %337 = vmin.xlane.f32.xlu1 %v336_v60 }
 0xb9f   :  { %v338_v62 = vpop.xlane.xlu1 %337 }
 0xba0   :  { %vm339_vm11 = vcmp.eq.f32.partialorder %v336_v60, %v338_v62  ;;  %v344_v2 = vcvt.f32.s32 %v338_v62 }
 0xba1   :  { %v340_v0 = vsel %vm339_vm11, %v335_v63, inf }
 0xba2   :  { %341 = vmin.xlane.f32.xlu0 %v340_v0  ;;  %v345_v4 = vshll.u32 %v344_v2, 16 }
 0xc2f   :  { %v342_v3 = vpop.xlane.xlu0 %341 }
 0xc30   :  { %v343_v5 = vcvt.f32.s32 %v342_v3 }
 0xc32   :  { %v346_v6 = vadd.s32 %v345_v4, %v343_v5 }
 0xc34   :  { %vm347_vm12 = vcmp.ne.s32.totalorder %v549_v54, %v346_v6 }
 0xc35   :  { %vm644_vm13 = vmand %vm631_vm9, %vm347_vm12 }
 0xc36   :  { %v350_v8 = vsel %vm644_vm13, %v557_v9, -inf }
 0xc37   :  { %v351_v10 = vsel %vm152_vm2, %v350_v8, -inf }
 0xc38   :  { %352 = vmax.xlane.f32.xlu1 %v351_v10 }
 0xcc5   :  { %v353_v11 = vpop.xlane.xlu1 %352 }
 0xcc6   :  { %vm354_vm14 = vcmp.eq.f32.partialorder %v350_v8, %v353_v11  ;;  %v373_v34 = vadd.f32 %v353_v11, %v349_v33 }
 0xcc7   :  { %v355_v12 = vsel %vm354_vm14, %v549_v54, 16 }
 0xcc8   :  { %v356_v14 = vsel %vm152_vm2, %v355_v12, 2147483647 }
 0xcc9   :  { %v358_v15 = vshra.s32 %v356_v14, 16  ;;  %v357_v17 = vand.u32 65535, %v356_v14 }
 0xccb   :  { %v360_v16 = vcvt.s32.f32 %v358_v15  ;;  %v359_v19 = vcvt.s32.f32 %v357_v17 }
 0xccd   :  { %361 = vmin.xlane.f32.xlu0 %v360_v16 }
 0xd5a   :  { %v362_v18 = vpop.xlane.xlu0 %361 }
 0xd5b   :  { %vm363_vm15 = vcmp.eq.f32.partialorder %v360_v16, %v362_v18  ;;  %v368_v22 = vcvt.f32.s32 %v362_v18 }
 0xd5c   :  { %v364_v21 = vsel %vm363_vm15, %v359_v19, inf }
 0xd5d   :  { %365 = vmin.xlane.f32.xlu1 %v364_v21  ;;  %v369_v24 = vshll.u32 %v368_v22, 16 }
 0xdea   :  { %v366_v23 = vpop.xlane.xlu1 %365 }
 0xdeb   :  { %v367_v25 = vcvt.f32.s32 %v366_v23 }
 0xded   :  { %v370_v26 = vadd.s32 %v369_v24, %v367_v25 }
 0xdef   :  { %vm371_vm0 = vcmp.ne.s32.totalorder %v549_v54, %v370_v26 }
 0xdf0   :  { %vm372_vm1 = vmand %vm644_vm13, %vm371_vm0 }
 0xdf1   :  { %v374_v27 = vsel %vm372_vm1, %v557_v9, -inf }
 0xdf2   :  { %v375_v28 = vsel %vm152_vm2, %v374_v27, -inf  ;;  %vm389_vm2 = vcmask 0  }
 0xdf3   :  { %376 = vmax.xlane.f32.xlu0 %v375_v28 }
 0xe80   :  { %v377_v54 = vpop.xlane.xlu0 %376 }
 0xe81   :  { %v378_v35 = vadd.f32 %v377_v54, %v373_v34 }
 0xe83   :  { %v380_v36 = vsel %vm379_vm3, %v378_v35, 0.0 }
 0xe84   :  { %v381_v38 = vrot.slane %v380_v36, 4 }
 0xe86   :  { %v382_v9 = vadd.f32 %v381_v38, %v380_v36 }
 0xe88   :  { %v383_v39 = vrot.slane %v382_v9, 2 }
 0xe8a   :  { %v384_v40 = vadd.f32 %v383_v39, %v382_v9 }
 0xe8c   :  { %v385_v41 = vrot.slane %v384_v40, 1 }
 0xe8e   :  { %v386_v13 = vadd.f32 %v385_v41, %v384_v40 }
 0xe90   :  { %v388_v47 = vmul.f32 0.0625, %v386_v13 }
 0xe92   :  { %390 = vst.msk [vmem:[#allocation7] sm:$0x1] %vm389_vm2, %v388_v47 }
 0xe93   :  { %470 = shalt.err (!%p467_p6)
}
 0xe94   :  { %s471_s22 = scalar_lea.hbm %s679_s3, 16 }
 0xe95   :  { %p472_p7 = scmp.ne.s32.totalorder %s679_s3, %s471_s22  ;;  %p475_p8 = scmp.lt.u32.totalorder %s471_s22, %s679_s3 }
 0xe97   :  { %p477_p9 = pnand %p475_p8, %p472_p7 }
 0xe99   :  { %480 = shalt.err (!%p477_p9)
}
 0xe9a   :  { %400 = dma.vmem_to_hbm [thread:$0]  %s398_s17, 16, %s679_s3, [#allocation4]  }
 0xe9b   :  { %485 = dma.done.wait [#allocation4], 16  }
 0xe9c   :  { %486 = vsyncadd [#allocation4], 4294967280 }
 0xe9d   :  { %404 = vsyncpa [#allocation3], 1 }
 0xe9e   :  { %405 = vsyncpa [#allocation6], 1 }
 0xe9f   :  { %406 = vsyncpa [#allocation4], 1 }

</bundles_post_ra>
